<compile_context>
chip_gen: v5e
topology: v5e:2x2
jax: 0.10.0
libtpu: 0.0.40
codegen_flags: <defaults>
</compile_context>

<pallas_src>
import functools

import jax
import jax.numpy as jnp
from jax import lax
from jax.experimental import pallas as pl
from jax.experimental.pallas import tpu as pltpu

EPS = 1e-5  # nn.LayerNorm default eps


# --------------------------------------------------------------------------
# kernel
# --------------------------------------------------------------------------
def global_pred_kernel(x_ref, w_ref, out_ref, m_sc, acc_sc, *,
                       layout, num_heads, num_params):
    def pc(name):
        r0, nr, nc = layout[name]            # static python ints
        return w_ref[r0:r0 + nr, 0:nc]

    n_idx = pl.program_id(1)
    P = num_params
    x = x_ref[0]                              # (C, Nt): channels on sublanes, pixels on lanes
    C = x.shape[0]

    @pl.when(n_idx == 0)
    def _init():
        m_sc[...] = jnp.full(m_sc.shape, -jnp.inf, jnp.float32)
        acc_sc[...] = jnp.zeros(acc_sc.shape, jnp.float32)

    # ---- pre_norm_mha LayerNorm over channels (axis 0, per pixel) ----
    mu = jnp.mean(x, axis=0, keepdims=True)
    xc = x - mu
    var = jnp.mean(xc * xc, axis=0, keepdims=True)
    xn = xc * lax.rsqrt(var + EPS) * pc("ln1w") + pc("ln1b")         # (C, Nt)

    # ---- fused query/key scores: scale & Wk folded into scorew at pack time.
    # The K bias is a per-row additive constant and drops out of softmax exactly.
    s = jnp.dot(pc("scorew"), xn, preferred_element_type=jnp.float32)  # (H*P, Nt)

    # ---- online softmax over N tiles, normalization deferred ----
    m_prev = m_sc[...]
    m_new = jnp.maximum(m_prev, jnp.max(s, axis=1, keepdims=True))    # (H*P, 1)
    e = jnp.exp(s - m_new)                                            # (H*P, Nt)
    alpha = jnp.exp(m_prev - m_new)                                   # (H*P, 1)

    # Ones-row augmentation: denominator comes out of the MXU for free.
    ones_row = jnp.ones((1, xn.shape[1]), jnp.float32)
    xn_aug = jnp.concatenate([xn, ones_row], axis=0)                  # (C+1, Nt)
    part = lax.dot_general(e, xn_aug, (((1,), (1,)), ((), ())),
                           preferred_element_type=jnp.float32)        # (H*P, C+1)
    acc_sc[...] = alpha * acc_sc[...] + part
    m_sc[...] = m_new

    # ---- finalize on the last N tile ----
    @pl.when(n_idx == pl.num_programs(1) - 1)
    def _finalize():
        acc = acc_sc[...]                                             # (H*P, C+1)
        sxn = acc[:, 0:C]                                             # sum_j e_ij * xn_j
        denom = acc[:, C:C + 1]                                       # sum_j e_ij
        # Exact reciprocal: only H*P values, the N-wide divide is already gone.
        inv = pl.reciprocal(denom)

        # V projection (and its bias) applied post-softmax on the tiny matrix.
        av = lax.dot_general(sxn, pc("wv"), (((1,), (1,)), ((), ())),
                             preferred_element_type=jnp.float32)      # sxn @ Wv^T
        av = av * inv + pc("bv_row")                                  # (H*P, C)

        # merge heads via constant 0/1 mask + cheap adds
        av = av * pc("hmask")
        o = av[0:P, :]
        for h in range(1, num_heads):
            o = o + av[h * P:(h + 1) * P, :]                          # (P, C)

        # output projection (kept transposed: tokens on lanes)
        y = lax.dot_general(pc("wp"), o, (((1,), (1,)), ((), ())),
                            preferred_element_type=jnp.float32) + pc("bp")  # (C, P)

        # residual + pre_norm_ffn (LN -> Linear -> SiLU -> Linear)
        mu2 = jnp.mean(y, axis=0, keepdims=True)
        yc = y - mu2
        var2 = jnp.mean(yc * yc, axis=0, keepdims=True)
        yn = yc * lax.rsqrt(var2 + EPS) * pc("ln2w") + pc("ln2b")     # (C, P)
        h1 = jnp.dot(pc("w1"), yn, preferred_element_type=jnp.float32) + pc("b1")
        h1 = h1 * jax.nn.sigmoid(h1)                                  # SiLU
        ffn = jnp.dot(pc("w2"), h1, preferred_element_type=jnp.float32) + pc("b2")
        gen = y + ffn                                                 # (C, P)

        # fused gamma/color heads (bases folded into bhead)
        out = jnp.sum(pc("whead") * gen, axis=0, keepdims=True) + pc("bhead")  # (1, P)
        out_ref[0] = out


# --------------------------------------------------------------------------
# parameter packing
# --------------------------------------------------------------------------
def _pack_params(pieces, width=128):
    """Stack 2D pieces along rows into one (R, width) lane-dense buffer."""
    rows, layout, r = [], {}, 0
    for name, a in pieces:
        a = jnp.asarray(a, jnp.float32)
        nr, nc = a.shape
        layout[name] = (r, nr, nc)
        rows.append(jnp.pad(a, ((0, 0), (0, width - nc))))
        r += nr
        pad = (-r) % 8
        if pad:
            rows.append(jnp.zeros((pad, width), jnp.float32))
            r += pad
    return jnp.concatenate(rows, axis=0), layout


def _pick_n_tile(N):
    for t in (8192, 4096, 2048, 1024, 512, 256, 128):
        if N % t == 0:
            return t
    # TODO(synk): for N not a multiple of 128, pad the pixel axis and mask the
    # padded columns to -inf before the online softmax accumulation.
    return N


def global_pred(x_nchw, params, *, num_heads):
    B, C, H, W = x_nchw.shape
    assert C % num_heads == 0
    N = H * W
    # NCHW -> (B, C, N): pure reshape, no transpose; N stays on the lane axis.
    tokens = x_nchw.reshape(B, C, N).astype(jnp.float32)

    P = params["qp"].shape[0]
    Dh = C // num_heads
    HP = num_heads * P
    scale = Dh ** -0.5

    col = lambda a: jnp.asarray(a, jnp.float32).reshape(-1, 1)

    # block-diagonal query matrix + head-selection mask (constants, built once)
    qblk = jnp.zeros((HP, C), jnp.float32)
    hmask = jnp.zeros((HP, C), jnp.float32)
    for h in range(num_heads):
        csl = slice(h * Dh, (h + 1) * Dh)
        rsl = slice(h * P, (h + 1) * P)
        qblk = qblk.at[rsl, csl].set(jnp.asarray(params["qp"], jnp.float32)[:, csl])
        hmask = hmask.at[rsl, csl].set(1.0)
    # fold scale + K projection; K bias drops out of the softmax exactly.
    scorew = scale * (qblk @ jnp.asarray(params["wk"], jnp.float32))   # (H*P, C)

    # fused gamma/color head weights (col 0 = gamma, cols 1..9 = color) + bases
    whead = jnp.concatenate(
        [params["wg"].T, jnp.broadcast_to(params["wc"].T, (C, P - 1))], axis=1)  # (C, P)
    bhead = jnp.concatenate(
        [params["bg"] + params["gbase"], params["bc"] + params["cbase"]], axis=1)  # (1, P)

    pieces = [
        ("scorew", scorew), ("hmask", hmask),
        ("wv", params["wv"]), ("bv_row", params["bv"]),
        ("wp", params["wp"]),
        ("w1", params["w1"]), ("w2", params["w2"]),
        ("whead", whead), ("bhead", bhead),
        ("ln1w", col(params["ln1w"])), ("ln1b", col(params["ln1b"])),
        ("bp", col(params["bp"])),
        ("ln2w", col(params["ln2w"])), ("ln2b", col(params["ln2b"])),
        ("b1", col(params["b1"])), ("b2", col(params["b2"])),
    ]
    wbuf, layout = _pack_params(pieces, width=128)   # lane-dense, unmasked loads

    tile_n = _pick_n_tile(N)
    n_steps = N // tile_n

    kernel = functools.partial(global_pred_kernel, layout=layout,
                               num_heads=num_heads, num_params=P)

    out = pl.pallas_call(
        kernel,
        out_shape=jax.ShapeDtypeStruct((B, 1, P), jnp.float32),
        grid_spec=pltpu.PrefetchScalarGridSpec(
            num_scalar_prefetch=0,
            grid=(B, n_steps),                        # N (reduction) axis last
            in_specs=[
                pl.BlockSpec((1, C, tile_n), lambda b, n: (b, 0, n)),
                pl.BlockSpec(wbuf.shape, lambda b, n: (0, 0)),   # fetched once
            ],
            out_specs=pl.BlockSpec((1, 1, P), lambda b, n: (b, 0, 0)),
            scratch_shapes=[
                pltpu.VMEM((HP, 1), jnp.float32),        # running max
                pltpu.VMEM((HP, C + 1), jnp.float32),    # running e @ [xn; 1]^T
            ],
        ),
        compiler_params=pltpu.CompilerParams(
            # batch shards across TensorCores on multi-TC chips; N is a reduction.
            dimension_semantics=("parallel", "arbitrary"),
            vmem_limit_bytes=32 * 1024 * 1024,           # safe on v5e/v6e/v7x
        ),
    )(tokens, wbuf)

    out = out.reshape(B, P)
    gamma = out[:, 0:1]
    color = out[:, 1:].reshape(B, 3, 3)
    return gamma, color


# --------------------------------------------------------------------------
# init + pure-JAX reference (mirrors the PyTorch forward)
# --------------------------------------------------------------------------
def init_params(key, C, num_params=10, ffn_ratio=4.0):
    """Synthetic init.  PyTorch inits biases/LN to 0/1; we add small noise so
    the bias/scale folds in the kernel are actually exercised by the check."""
    F = int(C * ffn_ratio)
    ks = jax.random.split(key, 17)
    tn = lambda k, shape, s=0.02: jax.random.normal(k, shape, jnp.float32) * s
    return dict(
        ln1w=1.0 + tn(ks[7], (1, C), 0.1), ln1b=tn(ks[8], (1, C), 0.1),
        wk=tn(ks[0], (C, C)), bk=tn(ks[9], (1, C), 0.1),
        wv=tn(ks[1], (C, C)), bv=tn(ks[10], (1, C), 0.1),
        qp=1.0 + tn(ks[16], (num_params, C), 0.1),        # module default: ones
        wp=tn(ks[2], (C, C)), bp=tn(ks[11], (1, C), 0.1),
        ln2w=1.0 + tn(ks[12], (1, C), 0.1), ln2b=tn(ks[13], (1, C), 0.1),
        w1=tn(ks[3], (F, C)), b1=tn(ks[14], (1, F), 0.1),
        w2=tn(ks[4], (C, F)), b2=tn(ks[15], (1, C), 0.1),
        wg=tn(ks[5], (1, C)), bg=jnp.zeros((1, 1), jnp.float32),
        gbase=jnp.ones((1, 1), jnp.float32),              # gamma_base = 1
        wc=tn(ks[6], (1, C)), bc=jnp.zeros((1, 1), jnp.float32),
        cbase=jnp.eye(3, dtype=jnp.float32).reshape(1, 9),  # color_base = eye(3)
    )


def reference(x_nchw, p, *, num_heads):
    """Pure-JAX reproduction of the PyTorch forward for verification."""
    B, C, H, W = x_nchw.shape
    t = jnp.transpose(x_nchw.reshape(B, C, H * W), (0, 2, 1)).astype(jnp.float32)

    def ln(x, w, b):
        mu = x.mean(-1, keepdims=True)
        var = ((x - mu) ** 2).mean(-1, keepdims=True)
        return (x - mu) / jnp.sqrt(var + EPS) * w + b

    xn = ln(t, p["ln1w"][0], p["ln1b"][0])
    k = xn @ p["wk"].T + p["bk"][0]
    v = xn @ p["wv"].T + p["bv"][0]
    P = p["qp"].shape[0]
    Dh = C // num_heads
    q = jnp.broadcast_to(p["qp"], (B, P, C)).reshape(B, P, num_heads, Dh).transpose(0, 2, 1, 3)
    kh = k.reshape(B, -1, num_heads, Dh).transpose(0, 2, 1, 3)
    vh = v.reshape(B, -1, num_heads, Dh).transpose(0, 2, 1, 3)
    attn = jax.nn.softmax((q @ jnp.swapaxes(kh, -2, -1)) * (Dh ** -0.5), axis=-1)
    o = (attn @ vh).transpose(0, 2, 1, 3).reshape(B, P, C)
    o = o @ p["wp"].T + p["bp"][0]
    yn = ln(o, p["ln2w"][0], p["ln2b"][0])
    h1 = yn @ p["w1"].T + p["b1"][0]
    h1 = h1 * jax.nn.sigmoid(h1)
    gen = o + (h1 @ p["w2"].T + p["b2"][0])
    gamma = (gen[:, 0:1] @ p["wg"].T)[..., 0] + p["bg"][0, 0] + p["gbase"][0, 0]  # (B,1)
    color = (gen[:, 1:] @ p["wc"].T)[..., 0] + p["bc"][0, 0]                      # (B,9)
    color = color.reshape(B, 3, 3) + p["cbase"].reshape(3, 3)
    return gamma, color


if __name__ == "__main__":
    B, C, H, W = 2, 4, 16, 16          # small shapes; C must be divisible by num_heads
    NUM_HEADS = 2

    key = jax.random.PRNGKey(0)
    kx, kp = jax.random.split(key)
    x = jax.random.normal(kx, (B, C, H, W), jnp.float32)
    params = init_params(kp, C)

    gamma, color = global_pred(x, params, num_heads=NUM_HEADS)
    gamma = jax.block_until_ready(gamma)
    color = jax.block_until_ready(color)

    g_ref, c_ref = reference(x, params, num_heads=NUM_HEADS)
    assert gamma.shape == (B, 1) and color.shape == (B, 3, 3)
    assert jnp.allclose(gamma, g_ref, rtol=5e-4, atol=5e-5)
    assert jnp.allclose(color, c_ref, rtol=5e-4, atol=5e-5)

    print("KERNEL_OK")
</pallas_src>

<mosaic_0001>
module attributes {stable_mosaic.version = 11 : i64} {
  func.func @global_pred_kernel(%arg0: i32, %arg1: i32, %arg2: memref<1x4x256xf32, #tpu.memory_space<vmem>>, %arg3: memref<176x128xf32, #tpu.memory_space<vmem>>, %arg4: memref<1x1x10xf32, #tpu.memory_space<vmem>>, %arg5: memref<20x1xf32, #tpu.memory_space<vmem>>, %arg6: memref<20x5xf32, #tpu.memory_space<vmem>>) attributes {dimension_semantics = [#tpu.dimension_semantics<parallel>, #tpu.dimension_semantics<arbitrary>], iteration_bounds = array<i64: 2, 1>, scalar_prefetch = 0 : i64, scratch_operands = 2 : i64, tpu.core_type = #tpu.core_type<tc>, window_params = [{transform_indices = @transform_0, window_bounds = array<i64: 1, 4, 256>}, {pipeline_mode = #tpu.pipeline_mode<synchronous>, transform_indices = @transform_1, window_bounds = array<i64: 176, 128>}, {transform_indices = @transform_2, window_bounds = array<i64: 1, 1, 10>}]} {
    %c0 = arith.constant 0 : index
    %c0_0 = arith.constant 0 : index
    %c0_1 = arith.constant 0 : index
    %0 = vector.load %arg2[%c0, %c0_0, %c0_1] : memref<1x4x256xf32, #tpu.memory_space<vmem>>, vector<1x4x256xf32>
    %1 = vector.shape_cast %0 : vector<1x4x256xf32> to vector<4x256xf32>
    %c0_i32 = arith.constant 0 : i32
    %2 = arith.cmpi eq, %arg1, %c0_i32 : i32
    %3 = arith.extui %2 : i1 to i32
    %c0_i32_2 = arith.constant 0 : i32
    %4 = arith.cmpi ne, %3, %c0_i32_2 : i32
    scf.if %4 {
      %cst_25 = arith.constant 0xFF800000 : f32
      %50 = vector.broadcast %cst_25 : f32 to vector<20x1xf32>
      %c0_26 = arith.constant 0 : index
      %c0_27 = arith.constant 0 : index
      %51 = vector.load %arg5[%c0_26, %c0_27] : memref<20x1xf32, #tpu.memory_space<vmem>>, vector<20x1xf32>
      tpu.vector_store %arg5[%c0_26, %c0_27], %50 {strides = array<i32>} : memref<20x1xf32, #tpu.memory_space<vmem>>, vector<20x1xf32>,
      %cst_28 = arith.constant 0.000000e+00 : f32
      %52 = vector.broadcast %cst_28 : f32 to vector<20x5xf32>
      %c0_29 = arith.constant 0 : index
      %c0_30 = arith.constant 0 : index
      %53 = vector.load %arg6[%c0_29, %c0_30] : memref<20x5xf32, #tpu.memory_space<vmem>>, vector<20x5xf32>
      tpu.vector_store %arg6[%c0_29, %c0_30], %52 {strides = array<i32>} : memref<20x5xf32, #tpu.memory_space<vmem>>, vector<20x5xf32>,
    } else {
    }
    %cst = arith.constant dense<0.000000e+00> : vector<256xf32>
    %5 = vector.multi_reduction <add>, %1, %cst [0] : vector<4x256xf32> to vector<256xf32>
    %6 = vector.shape_cast %5 : vector<256xf32> to vector<1x256xf32>
    %cst_3 = arith.constant 4.000000e+00 : f32
    %7 = vector.broadcast %cst_3 : f32 to vector<1x256xf32>
    %8 = arith.divf %6, %7 : vector<1x256xf32>
    %9 = vector.broadcast %8 : vector<1x256xf32> to vector<4x256xf32>
    %10 = arith.subf %1, %9 : vector<4x256xf32>
    %11 = arith.mulf %10, %10 : vector<4x256xf32>
    %cst_4 = arith.constant dense<0.000000e+00> : vector<256xf32>
    %12 = vector.multi_reduction <add>, %11, %cst_4 [0] : vector<4x256xf32> to vector<256xf32>
    %13 = vector.shape_cast %12 : vector<256xf32> to vector<1x256xf32>
    %cst_5 = arith.constant 4.000000e+00 : f32
    %14 = vector.broadcast %cst_5 : f32 to vector<1x256xf32>
    %15 = arith.divf %13, %14 : vector<1x256xf32>
    %cst_6 = arith.constant 9.99999974E-6 : f32
    %16 = vector.broadcast %cst_6 : f32 to vector<1x256xf32>
    %17 = arith.addf %15, %16 : vector<1x256xf32>
    %18 = math.rsqrt %17 : vector<1x256xf32>
    %19 = vector.broadcast %18 : vector<1x256xf32> to vector<4x256xf32>
    %20 = arith.mulf %10, %19 : vector<4x256xf32>
    %c112 = arith.constant 112 : index
    %c0_7 = arith.constant 0 : index
    %21 = vector.load %arg3[%c112, %c0_7] : memref<176x128xf32, #tpu.memory_space<vmem>>, vector<4x1xf32>
    %22 = vector.broadcast %21 : vector<4x1xf32> to vector<4x256xf32>
    %23 = arith.mulf %20, %22 : vector<4x256xf32>
    %c120 = arith.constant 120 : index
    %c0_8 = arith.constant 0 : index
    %24 = vector.load %arg3[%c120, %c0_8] : memref<176x128xf32, #tpu.memory_space<vmem>>, vector<4x1xf32>
    %25 = vector.broadcast %24 : vector<4x1xf32> to vector<4x256xf32>
    %26 = arith.addf %23, %25 : vector<4x256xf32>
    %c0_9 = arith.constant 0 : index
    %c0_10 = arith.constant 0 : index
    %27 = vector.load %arg3[%c0_9, %c0_10] : memref<176x128xf32, #tpu.memory_space<vmem>>, vector<20x4xf32>
    %cst_11 = arith.constant dense<0.000000e+00> : vector<20x256xf32>
    %28 = tpu.matmul %27, %26, %cst_11 {dimension_numbers = #tpu.dot_dimension_numbers<[1], [0], [0], [1], [0, 0, 1, 1], [], []>} : vector<20x4xf32>, vector<4x256xf32>, vector<20x256xf32> -> vector<20x256xf32>
    %c0_12 = arith.constant 0 : index
    %c0_13 = arith.constant 0 : index
    %29 = vector.load %arg5[%c0_12, %c0_13] : memref<20x1xf32, #tpu.memory_space<vmem>>, vector<20x1xf32>
    %cst_14 = arith.constant dense<0xFF800000> : vector<20xf32>
    %30 = vector.multi_reduction <maximumf>, %28, %cst_14 [1] : vector<20x256xf32> to vector<20xf32>
    %31 = vector.shape_cast %30 : vector<20xf32> to vector<20x1xf32>
    %32 = arith.maximumf %29, %31 : vector<20x1xf32>
    %33 = vector.broadcast %32 : vector<20x1xf32> to vector<20x256xf32>
    %34 = arith.subf %28, %33 : vector<20x256xf32>
    %35 = math.exp %34 : vector<20x256xf32>
    %36 = arith.subf %29, %32 : vector<20x1xf32>
    %37 = math.exp %36 : vector<20x1xf32>
    %cst_15 = arith.constant 1.000000e+00 : f32
    %38 = vector.broadcast %cst_15 : f32 to vector<1x256xf32>
    %39 = tpu.concatenate %26, %38 in 0 : vector<4x256xf32>, vector<1x256xf32> -> vector<5x256xf32>
    %cst_16 = arith.constant dense<0.000000e+00> : vector<20x5xf32>
    %40 = tpu.matmul %35, %39, %cst_16 {dimension_numbers = #tpu.dot_dimension_numbers<[1], [1], [0], [0], [0, 0, 1, 0], [], []>} : vector<20x256xf32>, vector<5x256xf32>, vector<20x5xf32> -> vector<20x5xf32>
    %c0_17 = arith.constant 0 : index
    %c0_18 = arith.constant 0 : index
    %41 = vector.load %arg6[%c0_17, %c0_18] : memref<20x5xf32, #tpu.memory_space<vmem>>, vector<20x5xf32>
    %42 = vector.broadcast %37 : vector<20x1xf32> to vector<20x5xf32>
    %43 = arith.mulf %42, %41 : vector<20x5xf32>
    %44 = arith.addf %43, %40 : vector<20x5xf32>
    %c0_19 = arith.constant 0 : index
    %c0_20 = arith.constant 0 : index
    %45 = vector.load %arg6[%c0_19, %c0_20] : memref<20x5xf32, #tpu.memory_space<vmem>>, vector<20x5xf32>
    tpu.vector_store %arg6[%c0_19, %c0_20], %44 {strides = array<i32>} : memref<20x5xf32, #tpu.memory_space<vmem>>, vector<20x5xf32>,
    %c0_21 = arith.constant 0 : index
    %c0_22 = arith.constant 0 : index
    %46 = vector.load %arg5[%c0_21, %c0_22] : memref<20x1xf32, #tpu.memory_space<vmem>>, vector<20x1xf32>
    tpu.vector_store %arg5[%c0_21, %c0_22], %32 {strides = array<i32>} : memref<20x1xf32, #tpu.memory_space<vmem>>, vector<20x1xf32>,
    %c0_i32_23 = arith.constant 0 : i32
    %47 = arith.cmpi eq, %arg1, %c0_i32_23 : i32
    %48 = arith.extui %47 : i1 to i32
    %c0_i32_24 = arith.constant 0 : i32
    %49 = arith.cmpi ne, %48, %c0_i32_24 : i32
    scf.if %49 {
      %c0_25 = arith.constant 0 : index
      %c0_26 = arith.constant 0 : index
      %50 = vector.load %arg6[%c0_25, %c0_26] : memref<20x5xf32, #tpu.memory_space<vmem>>, vector<20x5xf32>
      %51 = vector.extract_strided_slice %50 {offsets = [0, 0], sizes = [20, 4], strides = [1, 1]} : vector<20x5xf32> to vector<20x4xf32>
      %52 = vector.extract_strided_slice %50 {offsets = [0, 4], sizes = [20, 1], strides = [1, 1]} : vector<20x5xf32> to vector<20x1xf32>
      %53 = tpu.reciprocal %52 : vector<20x1xf32> -> vector<20x1xf32>
      %c48 = arith.constant 48 : index
      %c0_27 = arith.constant 0 : index
      %54 = vector.load %arg3[%c48, %c0_27] : memref<176x128xf32, #tpu.memory_space<vmem>>, vector<4x4xf32>
      %cst_28 = arith.constant dense<0.000000e+00> : vector<20x4xf32>
      %55 = tpu.matmul %51, %54, %cst_28 {dimension_numbers = #tpu.dot_dimension_numbers<[1], [1], [0], [0], [0, 0, 1, 0], [], []>} : vector<20x4xf32>, vector<4x4xf32>, vector<20x4xf32> -> vector<20x4xf32>
      %56 = vector.broadcast %53 : vector<20x1xf32> to vector<20x4xf32>
      %57 = arith.mulf %55, %56 : vector<20x4xf32>
      %c56 = arith.constant 56 : index
      %c0_29 = arith.constant 0 : index
      %58 = vector.load %arg3[%c56, %c0_29] : memref<176x128xf32, #tpu.memory_space<vmem>>, vector<1x4xf32>
      %59 = vector.broadcast %58 : vector<1x4xf32> to vector<20x4xf32>
      %60 = arith.addf %57, %59 : vector<20x4xf32>
      %c24 = arith.constant 24 : index
      %c0_30 = arith.constant 0 : index
      %61 = vector.load %arg3[%c24, %c0_30] : memref<176x128xf32, #tpu.memory_space<vmem>>, vector<20x4xf32>
      %62 = arith.mulf %60, %61 : vector<20x4xf32>
      %63 = vector.extract_strided_slice %62 {offsets = [0, 0], sizes = [10, 4], strides = [1, 1]} : vector<20x4xf32> to vector<10x4xf32>
      %64 = vector.extract_strided_slice %62 {offsets = [10, 0], sizes = [10, 4], strides = [1, 1]} : vector<20x4xf32> to vector<10x4xf32>
      %65 = arith.addf %63, %64 : vector<10x4xf32>
      %c64 = arith.constant 64 : index
      %c0_31 = arith.constant 0 : index
      %66 = vector.load %arg3[%c64, %c0_31] : memref<176x128xf32, #tpu.memory_space<vmem>>, vector<4x4xf32>
      %cst_32 = arith.constant dense<0.000000e+00> : vector<4x10xf32>
      %67 = tpu.matmul %66, %65, %cst_32 {dimension_numbers = #tpu.dot_dimension_numbers<[1], [1], [0], [0], [0, 0, 1, 0], [], []>} : vector<4x4xf32>, vector<10x4xf32>, vector<4x10xf32> -> vector<4x10xf32>
      %c128 = arith.constant 128 : index
      %c0_33 = arith.constant 0 : index
      %68 = vector.load %arg3[%c128, %c0_33] : memref<176x128xf32, #tpu.memory_space<vmem>>, vector<4x1xf32>
      %69 = vector.broadcast %68 : vector<4x1xf32> to vector<4x10xf32>
      %70 = arith.addf %67, %69 : vector<4x10xf32>
      %cst_34 = arith.constant dense<0.000000e+00> : vector<10xf32>
      %71 = vector.multi_reduction <add>, %70, %cst_34 [0] : vector<4x10xf32> to vector<10xf32>
      %72 = vector.shape_cast %71 : vector<10xf32> to vector<1x10xf32>
      %cst_35 = arith.constant 4.000000e+00 : f32
      %73 = vector.broadcast %cst_35 : f32 to vector<1x10xf32>
      %74 = arith.divf %72, %73 : vector<1x10xf32>
      %75 = vector.broadcast %74 : vector<1x10xf32> to vector<4x10xf32>
      %76 = arith.subf %70, %75 : vector<4x10xf32>
      %77 = arith.mulf %76, %76 : vector<4x10xf32>
      %cst_36 = arith.constant dense<0.000000e+00> : vector<10xf32>
      %78 = vector.multi_reduction <add>, %77, %cst_36 [0] : vector<4x10xf32> to vector<10xf32>
      %79 = vector.shape_cast %78 : vector<10xf32> to vector<1x10xf32>
      %cst_37 = arith.constant 4.000000e+00 : f32
      %80 = vector.broadcast %cst_37 : f32 to vector<1x10xf32>
      %81 = arith.divf %79, %80 : vector<1x10xf32>
      %cst_38 = arith.constant 9.99999974E-6 : f32
      %82 = vector.broadcast %cst_38 : f32 to vector<1x10xf32>
      %83 = arith.addf %81, %82 : vector<1x10xf32>
      %84 = math.rsqrt %83 : vector<1x10xf32>
      %85 = vector.broadcast %84 : vector<1x10xf32> to vector<4x10xf32>
      %86 = arith.mulf %76, %85 : vector<4x10xf32>
      %c136 = arith.constant 136 : index
      %c0_39 = arith.constant 0 : index
      %87 = vector.load %arg3[%c136, %c0_39] : memref<176x128xf32, #tpu.memory_space<vmem>>, vector<4x1xf32>
      %88 = vector.broadcast %87 : vector<4x1xf32> to vector<4x10xf32>
      %89 = arith.mulf %86, %88 : vector<4x10xf32>
      %c144 = arith.constant 144 : index
      %c0_40 = arith.constant 0 : index
      %90 = vector.load %arg3[%c144, %c0_40] : memref<176x128xf32, #tpu.memory_space<vmem>>, vector<4x1xf32>
      %91 = vector.broadcast %90 : vector<4x1xf32> to vector<4x10xf32>
      %92 = arith.addf %89, %91 : vector<4x10xf32>
      %c72 = arith.constant 72 : index
      %c0_41 = arith.constant 0 : index
      %93 = vector.load %arg3[%c72, %c0_41] : memref<176x128xf32, #tpu.memory_space<vmem>>, vector<16x4xf32>
      %cst_42 = arith.constant dense<0.000000e+00> : vector<16x10xf32>
      %94 = tpu.matmul %93, %92, %cst_42 {dimension_numbers = #tpu.dot_dimension_numbers<[1], [0], [0], [1], [0, 0, 1, 1], [], []>} : vector<16x4xf32>, vector<4x10xf32>, vector<16x10xf32> -> vector<16x10xf32>
      %c152 = arith.constant 152 : index
      %c0_43 = arith.constant 0 : index
      %95 = vector.load %arg3[%c152, %c0_43] : memref<176x128xf32, #tpu.memory_space<vmem>>, vector<16x1xf32>
      %96 = vector.broadcast %95 : vector<16x1xf32> to vector<16x10xf32>
      %97 = arith.addf %94, %96 : vector<16x10xf32>
      %98 = arith.negf %97 : vector<16x10xf32>
      %99 = math.exp %98 : vector<16x10xf32>
      %cst_44 = arith.constant 1.000000e+00 : f32
      %100 = vector.broadcast %cst_44 : f32 to vector<16x10xf32>
      %101 = arith.addf %100, %99 : vector<16x10xf32>
      %102 = arith.divf %100, %101 : vector<16x10xf32>
      %103 = arith.mulf %97, %102 : vector<16x10xf32>
      %c88 = arith.constant 88 : index
      %c0_45 = arith.constant 0 : index
      %104 = vector.load %arg3[%c88, %c0_45] : memref<176x128xf32, #tpu.memory_space<vmem>>, vector<4x16xf32>
      %cst_46 = arith.constant dense<0.000000e+00> : vector<4x10xf32>
      %105 = tpu.matmul %104, %103, %cst_46 {dimension_numbers = #tpu.dot_dimension_numbers<[1], [0], [0], [1], [0, 0, 1, 1], [], []>} : vector<4x16xf32>, vector<16x10xf32>, vector<4x10xf32> -> vector<4x10xf32>
      %c168 = arith.constant 168 : index
      %c0_47 = arith.constant 0 : index
      %106 = vector.load %arg3[%c168, %c0_47] : memref<176x128xf32, #tpu.memory_space<vmem>>, vector<4x1xf32>
      %107 = vector.broadcast %106 : vector<4x1xf32> to vector<4x10xf32>
      %108 = arith.addf %105, %107 : vector<4x10xf32>
      %109 = arith.addf %70, %108 : vector<4x10xf32>
      %c96 = arith.constant 96 : index
      %c0_48 = arith.constant 0 : index
      %110 = vector.load %arg3[%c96, %c0_48] : memref<176x128xf32, #tpu.memory_space<vmem>>, vector<4x10xf32>
      %111 = arith.mulf %110, %109 : vector<4x10xf32>
      %cst_49 = arith.constant dense<0.000000e+00> : vector<10xf32>
      %112 = vector.multi_reduction <add>, %111, %cst_49 [0] : vector<4x10xf32> to vector<10xf32>
      %113 = vector.shape_cast %112 : vector<10xf32> to vector<1x10xf32>
      %c104 = arith.constant 104 : index
      %c0_50 = arith.constant 0 : index
      %114 = vector.load %arg3[%c104, %c0_50] : memref<176x128xf32, #tpu.memory_space<vmem>>, vector<1x10xf32>
      %115 = arith.addf %113, %114 : vector<1x10xf32>
      %c0_51 = arith.constant 0 : index
      %c0_52 = arith.constant 0 : index
      %c0_53 = arith.constant 0 : index
      %116 = vector.load %arg4[%c0_51, %c0_52, %c0_53] : memref<1x1x10xf32, #tpu.memory_space<vmem>>, vector<1x1x10xf32>
      %117 = vector.shape_cast %116 : vector<1x1x10xf32> to vector<1x10xf32>
      %118 = vector.shape_cast %115 : vector<1x10xf32> to vector<1x1x10xf32>
      tpu.vector_store %arg4[%c0_51, %c0_52, %c0_53], %118 {strides = array<i32>} : memref<1x1x10xf32, #tpu.memory_space<vmem>>, vector<1x1x10xf32>,
    } else {
    }
    return
  }
  func.func @transform_0(%arg0: i32, %arg1: i32) -> (i32, i32, i32) {
    %c0_i32 = arith.constant 0 : i32
    %c0_i32_0 = arith.constant 0 : i32
    return %arg0, %c0_i32, %arg1 : i32, i32, i32
  }
  func.func @transform_1(%arg0: i32, %arg1: i32) -> (i32, i32) {
    %c0_i32 = arith.constant 0 : i32
    %c0_i32_0 = arith.constant 0 : i32
    %c0_i32_1 = arith.constant 0 : i32
    return %c0_i32, %c0_i32_0 : i32, i32
  }
  func.func @transform_2(%arg0: i32, %arg1: i32) -> (i32, i32, i32) {
    %c0_i32 = arith.constant 0 : i32
    %c0_i32_0 = arith.constant 0 : i32
    %c0_i32_1 = arith.constant 0 : i32
    return %arg0, %c0_i32, %c0_i32_0 : i32, i32, i32
  }
}

</mosaic_0001>

<bundles_post_ra>
// kernel: tpu_custom_call.1
= control target key start
LH: loop header
LB: loop body
LE: loop exit
PB: predicated region body
PF: predicated region fallthrough
CT: control target
= control target key end

     0   :  { %7 = vsyncpa [#allocation5], 0  ;;  %s1536_s0 = inlined_call_operand.hbm [shape: f32[2,4,256], index: 0, kind: input, shape index: {}]   ;;  %s1537_s1 = inlined_call_operand.hbm [shape: f32[176,128], index: 1, kind: input, shape index: {}]   ;;  %s1538_s2 = inlined_call_operand.hbm [shape: f32[2,1,10], index: 2, kind: output, shape index: {}]  }
   0x1   :  { %9 = vsyncpa [#allocation5 + $0x1], 0 }
   0x2   :  { %10 = vsyncpa [#allocation8], 0 }
   0x3   :  { %11 = vsyncpa [#allocation6], 0 }
   0x4   :  { %13 = vsyncpa [#allocation6 + $0x1], 0  ;;  %s1321_s9 = smov 0   ;;  %s1323_s10 = smov 0  }
   0x5   :  { %s1325_s11 = smov 0   ;;  %s1327_s12 = smov 0  }
   0x6   :  { %s1329_s13 = smov 0   ;;  %s1331_s14 = smov 0  }
   0x7 LB: > { %s982_s15 = sadd.s32 4294967295, %s1295_s14   ;;  %p984_p0 = scmp.ge.s32.totalorder %s1295_s14, 1  ;;  %s1295_s14 = sphi %s1331_s14, %s19_s14   ;;  %s1291_s13 = sphi %s1329_s13, %s1549_s13   ;;  %s1287_s12 = sphi %s1327_s12, %s1548_s12   ;;  %s1283_s11 = sphi %s1325_s11, %s1547_s11   ;;  %s1279_s10 = sphi %s1323_s10, %s1546_s10   ;;  %s1275_s9 = sphi %s1321_s9, %s1545_s9  }
   0x8   : > { %p1353_p1 = scmp.eq.s32.totalorder %s982_s15, 0  ;;  %p111_p2 = scmp.lt.s32.totalorder %s1295_s14, 3 }
   0x9   : > { %s122_s19 = sshll.u32 %s1537_s1, 4  ;;  %s1297_s21 = smov [#allocation7]   ;;  %s123_s19 = int_to_ptr.hbm [resolvable:$true] %s122_s19 }
   0xa   : > { %p1361_p3 = pnand %p984_p0, %p111_p2  ;;  %s124_s22 = sshll.u32 %s1297_s21, 4  ;;  %s125_s22 = int_to_ptr.vmem [resolvable:$true] %s124_s22 }
   0xb   : > { %p986_p6 = scmp.ge.s32.totalorder %s1295_s14, 2  ;;  %s1298_s23 = smov 128  }
   0xc   : > { %p1026_p4 = pneg %p1361_p3  ;;  %s1299_s24 = smov 8  }
   0xd   : > { %s983_s25 = sadd.s32 4294967294, %s1295_s14   ;;  %s31_s26 = sadd.s32 1, %s1291_s13 }
   0xe   : > { %p1027_p5 = pnand %p1026_p4, %p1353_p1  ;;  %s40_s27 = sadd.s32 1, %s1283_s11 }
   0xf   : > { %p33_p7 = scmp.ge.s32.totalorder %s31_s26, 2  ;;  %p47_p8 = scmp.ne.s32.totalorder %s1283_s11, %s1279_s10 }
  0x10   : > { %1029 = dma.hbm_to_vmem [thread:$0]  (!%p1027_p5), %s123_s19, 2816, %s125_s22, [#allocation8], %s1298_s23, %s1298_s23, %s1299_s24  }
  0x11   : > { %p48_p9 = scmp.eq.s32.totalorder %s1295_s14, 0  ;;  %p53_p10 = scmp.ne.s32.totalorder %s1279_s10, %s1275_s9 }
  0x12   : > { %s1551_s26 = smov (%p33_p7, %s31_s26), 0  ;;  %p98_p13 = scmp.eq.s32.totalorder %s982_s15, 1 }
  0x13   : > { %p1380_p11 = por %p48_p9, %p47_p8  ;;  %p1386_p12 = por %p1353_p1, %p53_p10 }
  0x14   : > { %s35_s30 = ssub.s32 %s1291_s13, %s1551_s26  ;;  %p104_p2 = scmp.eq.s32.totalorder %s983_s25, 1 }
  0x15   : > { %p38_p0 = scmp.eq.s32.totalorder %s35_s30, 0  ;;  %p1392_p4 = por %p98_p13, %p47_p8 }
  0x16   : > { %p1039_p5 = scmp.lt.s32.totalorder %s1295_s14, 2  ;;  %p1400_p7 = por %p104_p2, %p53_p10 }
  0x17   : > { %s1398_s4 = scalar_select %p38_p0, %s1283_s11, %s40_s27  }
  0x18   : > { %s138_s6 = sand.u32 1, %s1283_s11   ;;  %s1016_s8 = sshll.u32 %s1291_s13, 3 }
  0x19   : > { %s987_s7 = sshll.u32 %s138_s6, 3  ;;  %s149_s15 = scalar_lea.hbm %s1536_s0, %s1016_s8 }
  0x1a   : > { %s142_s19 = scalar_lea.vmem [#allocation4], %s987_s7  ;;  %s151_s22 = sshll.u32 %s149_s15, 4  ;;  %s152_s22 = int_to_ptr.hbm [resolvable:$true] %s151_s22 }
  0x1b   : > { %s153_s21 = sshll.u32 %s142_s19, 4  ;;  %p1031_p8 = pnand %p1039_p5, %p1380_p11  ;;  %s154_s21 = int_to_ptr.vmem [resolvable:$true] %s153_s21 }
  0x1c   : > { %s139_s23 = scalar_lea.sflag [#allocation5], %s138_s6  ;;  %162 = sbr.rel (%p1361_p3) target bundleno = 1385 (0x569), region = 28 }
  0x1d   : > { %1033 = dma.hbm_to_vmem [thread:$0]  (!%p1031_p8), %s152_s22, 128, %s154_s21, %s139_s23  }
  0x1e   : > { %s1414_s24 = sand.u32 (!%p1361_p3), 1, %s1279_s10  }
  0x1f   : > { %s991_s25 = sshll.u32 (!%p1361_p3), %s1414_s24, 3  ;;  %s165_s27 = scalar_lea.sflag (!%p1361_p3), [#allocation5], %s1414_s24 }
  0x20   : > { %s168_s30 = scalar_lea.vmem (!%p1361_p3), [#allocation4], %s991_s25 }
  0x21   : > { %1262 = dma.done.wait (%p1386_p12), %s165_s27, 128  }
  0x22   : > { %1264 = vsyncadd (%p1386_p12), %s165_s27, 4294967168 }
  0x23   : > { %1266 = dma.done.wait (%p1353_p1), [#allocation8], 2816  }
  0x24   : > { %1268 = vsyncadd (%p1353_p1), [#allocation8], 4294964480  ;;  %v1300_v0 = vmov 0   ;;  %v297_v1 = vld [vmem:[#allocation7 + $0x70] sm:$0xf]  ;;  %v1301_v2 = vmov 4.0   ;;  %s891_s28 = scalar_lea.hbm %s1538_s2, %s1287_s12 }
  0x25   : > { %1099 = vset.pattern.permute.xlu0 %v1300_v0  ;;  %1100 = vset.pattern.permute.xlu2 %v1300_v0  ;;  %1109 = vrcp.f32 %v1301_v2  ;;  %v308_v3 = vld [vmem:[#allocation7 + $0x78] sm:$0xf]  ;;  %vm216_vm0 = vcmask 1043456   ;;  %vm326_vm8 = vcmask 31744   ;;  %vm200_vm9 = vcmask 7168   ;;  %s193_s29 = scalar_lea.vmem [#allocation9], %s1414_s24 }
  0x26   : > { %1101 = vset.pattern.permute.xlu1 %v1300_v0  ;;  %300 = vperm.xlu0 %1099, %v297_v1   ;;  %v195_v5 = vld [vmem:[%s168_s30] sm:$0xff]  ;;  %vm203_vm10 = vcmask 3072   ;;  %vm208_vm11 = vcmask 35840   ;;  %vm205_vm12 = vcmask 39936   ;;  %s893_s6 = sshll.u32 %s193_s29, 4  ;;  %s895_s7 = sshll.u32 %s891_s28, 4  ;;  %s894_s6 = int_to_ptr.vmem [resolvable:$true] %s893_s6  ;;  %s896_s7 = int_to_ptr.hbm [resolvable:$true] %s895_s7 }
  0x27   : > { %211 = vst [vmem:[#allocation1] ss:$2 sm:$0xff] %v195_v5  ;;  %s883_s8 = scalar_lea.sflag [#allocation6], %s1414_s24  ;;  %s1223_s17 = sshra.s32 %s896_s7, 4  ;;  %s1224_s17 = int_to_ptr.hbm [resolvable:$true] %s1223_s17 }
  0x28   : > { %s1225_s18 = scalar_lea.hbm %s1224_s17, 1  ;;  %s1229_s19 = scalar_lea.hbm %s1538_s2, 2 }
  0x29   : > { %p1226_p1 = scmp.ne.s32.totalorder %s1224_s17, %s1225_s18  ;;  %p1230_p10 = scmp.lt.s32.totalorder %s1224_s17, %s1538_s2 }
  0x2a   : > { %p1231_p11 = scmp.lt.s32.totalorder %s1229_s19, %s1225_s18 }
  0x2b   : > { %v1110_v4 = vpop.eup %1109  ;;  %p1227_p3 = pnand %p1226_p1, %p1392_p4 }
  0x2c   : > { %v232_v6 = vmul.f32 4.0, %v1110_v4  ;;  %vm236_vm1 = vweird.f32 %v1110_v4  ;;  %p1232_p12 = por %p1231_p11, %p1230_p10 }
  0x2d   : > { %p1228_p9 = pneg %p1227_p3 }
  0x2e   : > { %311 = vperm.xlu0 %1099, %v308_v3   ;;  %v233_v7 = vsub.f32 1.0, %v232_v6  ;;  %v213_v8 = vld.sshfl [vmem:[#allocation1 + $0x8] sm:$0xff pattern:$0x75316420]  ;;  %v1302_v3 = vmov 839922192  }
  0x2f   : > { %v224_v9 = vsel %vm216_vm0, %v213_v8, 0.0  ;;  %v212_v10 = vld.sshfl [vmem:[#allocation1] sm:$0xff pattern:$0x75316420]  ;;  %p1233_p13 = pnand %p1232_p12, %p1228_p9 }
  0x30   : > { %v225_v11 = vrot.slane %v224_v9, 4  ;;  %v234_v12 = vmul.f32 %v1110_v4, %v233_v7  ;;  %v217_v13 = vsel %vm216_vm0, %v212_v10, 0.0 }
  0x31   : > { %v218_v14 = vrot.slane %v217_v13, 4 }
  0x32   : > { %v226_v15 = vadd.f32 %v225_v11, %v224_v9  ;;  %v235_v18 = vadd.f32 %v1110_v4, %v234_v12 }
  0x33   : > { %v219_v16 = vadd.f32 %v218_v14, %v217_v13 }
  0x34   : > { %v227_v17 = vrot.slane %v226_v15, 2  ;;  %v1431_v23 = vsel %vm236_vm1, %v1110_v4, %v235_v18  ;;  %v303_v4 = vunpack.c.l.s4 %v1302_v3 }
  0x35   : > { %v220_v19 = vrot.slane %v219_v16, 2 }
  0x36   : > { %v228_v20 = vadd.f32 %v227_v17, %v226_v15  ;;  %v304_v8 = vunpack.c.0.s8 %v303_v4  ;;  %v319_v17 = vld [vmem:[#allocation7] sm:$0xff] }
  0x37   : > { %v221_v21 = vadd.f32 %v220_v19, %v219_v16  ;;  %v321_v16 = vld [vmem:[#allocation7 + $0x10] sm:$0xf] }
  0x38   : > { %v229_v22 = vrot.slane %v228_v20, 1 }
  0x39   : > { %v222_v24 = vrot.slane %v221_v21, 1 }
  0x3a   : > { %v230_v25 = vadd.f32 %v229_v22, %v228_v20  ;;  %v320_v20 = vld [vmem:[#allocation7 + $0x8] sm:$0xff] }
  0x3b   : > { %v223_v26 = vadd.f32 %v222_v24, %v221_v21 }
  0x3c   : > { %v239_v27 = vmul.f32 %v1431_v23, %v230_v25 }
  0x3d   : > { %v238_v28 = vmul.f32 %v1431_v23, %v223_v26  ;;  %v1303_v26 = vmov -inf  }
  0x3e   : > { %v242_v29 = vrot.slane %v239_v27, 4  ;;  %201 = vst.msk [vmem:[#allocation2] sm:$0xff] %vm200_vm9, %v1303_v26 }
  0x3f   : > { %202 = vst.msk [vmem:[#allocation2 + $0x8] sm:$0xff] %vm200_vm9, %v1303_v26 }
  0x40   : > { %v243_v30 = vsel %vm216_vm0, %v238_v28, %v242_v29  ;;  %204 = vst.msk [vmem:[#allocation2 + $0x10] sm:$0xf] %vm203_vm10, %v1303_v26 }
  0x41   : > { %v245_v31 = vsub.f32 %v195_v5, %v243_v30 }
  0x43   : > { %v246_v32 = vmul.f32 %v245_v31, %v245_v31 }
  0x45   : > { %248 = vst [vmem:[#allocation1] ss:$2 sm:$0xff] %v246_v32 }
  0x4c   : > { %v250_v33 = vld.sshfl [vmem:[#allocation1 + $0x8] sm:$0xff pattern:$0x75316420]  ;;  %v249_v35 = vld.sshfl [vmem:[#allocation1] sm:$0xff pattern:$0x75316420] }
  0x4d   : > { %v260_v34 = vsel %vm216_vm0, %v250_v33, 0.0  ;;  %v253_v37 = vsel %vm216_vm0, %v249_v35, 0.0 }
  0x4e   : > { %v261_v36 = vrot.slane %v260_v34, 4  ;;  %v254_v38 = vrot.slane %v253_v37, 4 }
  0x50   : > { %v262_v39 = vadd.f32 %v261_v36, %v260_v34  ;;  %v255_v40 = vadd.f32 %v254_v38, %v253_v37  ;;  %v392_v38 = vld [vmem:[#allocation2] sm:$0xff] }
  0x52   : > { %v263_v41 = vrot.slane %v262_v39, 2  ;;  %v256_v42 = vrot.slane %v255_v40, 2 }
  0x54   : > { %v264_v43 = vadd.f32 %v263_v41, %v262_v39  ;;  %v257_v44 = vadd.f32 %v256_v42, %v255_v40  ;;  %v393_v42 = vld [vmem:[#allocation2 + $0x8] sm:$0xff] }
  0x56   : > { %v265_v45 = vrot.slane %v264_v43, 1  ;;  %v258_v46 = vrot.slane %v257_v44, 1 }
  0x58   : > { %v266_v47 = vadd.f32 %v265_v45, %v264_v43  ;;  %v259_v48 = vadd.f32 %v258_v46, %v257_v44 }
  0x5a   : > { %v268_v49 = vmul.f32 %v266_v47, %v1431_v23  ;;  %v267_v50 = vmul.f32 %v259_v48, %v1431_v23  ;;  %v394_v47 = vld [vmem:[#allocation2 + $0x10] sm:$0xf] }
  0x5c   : > { %v270_v51 = vadd.f32 1e-05, %v268_v49  ;;  %v269_v52 = vadd.f32 1e-05, %v267_v50 }
  0x5e   : > { %1111 = vrsqrt.f32 %v270_v51  ;;  %vm287_vm2 = vweird.f32 %v270_v51  ;;  %vm277_vm5 = vweird.f32 %v269_v52 }
  0x5f   : > { %1113 = vrsqrt.f32 %v269_v52 }
  0x64   : > { %v1112_v53 = vpop.eup %1111 }
  0x65   : > { %v282_v54 = vmul.f32 %v1112_v53, %v270_v51  ;;  %v1114_v55 = vpop.eup %1113  ;;  %vm288_vm3 = vweird.f32 %v1112_v53 }
  0x66   : > { %v272_v56 = vmul.f32 %v1114_v55, %v269_v52  ;;  %vm289_vm4 = vmor %vm287_vm2, %vm288_vm3  ;;  %vm278_vm6 = vweird.f32 %v1114_v55 }
  0x67   : > { %v283_v57 = vmul.f32 %v1112_v53, %v282_v54  ;;  %vm279_vm7 = vmor %vm277_vm5, %vm278_vm6 }
  0x68   : > { %v273_v58 = vmul.f32 %v1114_v55, %v272_v56  ;;  %v1304_v56 = vmov 0.0  }
  0x69   : > { %v284_v59 = vmul.f32 0.5, %v283_v57  ;;  %209 = vst.msk [vmem:[#allocation3 + $0x10] sm:$0xf] %vm208_vm11, %v1304_v56 }
  0x6a   : > { %v274_v60 = vmul.f32 0.5, %v273_v58  ;;  %206 = vst.msk [vmem:[#allocation3] sm:$0xff] %vm205_vm12, %v1304_v56 }
  0x6b   : > { %v285_v61 = vsub.f32 1.5, %v284_v59  ;;  %207 = vst.msk [vmem:[#allocation3 + $0x8] sm:$0xff] %vm205_vm12, %v1304_v56 }
  0x6c   : > { %v275_v62 = vsub.f32 1.5, %v274_v60 }
  0x6d   : > { %v286_v63 = vmul.f32 %v1112_v53, %v285_v61 }
  0x6e   : > { %v276_v1 = vmul.f32 %v1114_v55, %v275_v62 }
  0x6f   : > { %v290_v2 = vsel %vm289_vm4, %v1112_v53, %v286_v63 }
  0x70   : > { %v293_v5 = vrot.slane %v290_v2, 4  ;;  %v280_v6 = vsel %vm279_vm7, %v1114_v55, %v276_v1 }
  0x72   : > { %v294_v9 = vsel %vm216_vm0, %v280_v6, %v293_v5 }
  0x73   : > { %v296_v10 = vmul.f32 %v294_v9, %v245_v31 }
  0x98   : > { %v301_v7 = vpop.permute.xlu0 %300 }
  0x99   : > { %v305_v11 = vperm.slane %v301_v7, %v304_v8 }
  0x9b   : > { %v307_v13 = vmul.f32 %v305_v11, %v296_v10 }
  0xa0   : > { %v312_v12 = vpop.permute.xlu0 %311 }
  0xa1   : > { %v316_v14 = vperm.slane %v312_v12, %v304_v8 }
  0xa3   : > { %v318_v15 = vadd.f32 %v316_v14, %v307_v13 }
  0xa5   : > { %323 = vst [vmem:[#allocation1] ss:$2 sm:$0xff] %v318_v15 }
  0xac   : > { %v324_v18 = vld.sshfl [vmem:[#allocation1] sm:$0xff pattern:$0x75316420]  ;;  %v325_v19 = vld.sshfl [vmem:[#allocation1 + $0x8] sm:$0xff pattern:$0x75316420] }
  0xad   : > { %993 = vmatpush.msk.msra.mxu0 %vm216_vm0, %v324_v18  ;;  %1017 = vmatpush.msk.msra.mxu1 %vm216_vm0, %v324_v18  ;;  %451 = vst [vmem:[#allocation1] ss:$2 sm:$0xff] %v318_v15  ;;  %v592_v15 = vld [vmem:[#allocation7 + $0x30] sm:$0xf] }
  0xae   : > { %996 = vmatmul.msk.f32.vlgmr.msra.gmra.mxu1 %vm326_vm8, %v321_v16  ;;  %994 = vmatmul.msk.f32.vlgmr.msra.gmra.mxu0 %vm326_vm8, %v319_v17 }
  0xaf   : > { %997 = vmatpush.msk.msrb.mxu1 %vm216_vm0, %v325_v19  ;;  %1001 = vmatpush.xpose.msk.msrb.mxu0 %vm326_vm8, %v592_v15  ;;  %v753_v15 = vld [vmem:[#allocation7 + $0x98] sm:$0xff] }
  0xb4   : > { %v452_v21 = vld.sshfl [vmem:[#allocation1] sm:$0xff pattern:$0x75316420]  ;;  %v453_v22 = vld.sshfl [vmem:[#allocation1 + $0x8] sm:$0xff pattern:$0x75316420] }
  0xb5   : > { %v456_v24 = vsel %vm216_vm0, %v452_v21, 1.0  ;;  %v457_v25 = vsel %vm216_vm0, %v453_v22, 1.0 }
  0xb6   : > { %998 = vmatmul.msk.f32.vlgmr.msrb.gmra.mxu1 %vm326_vm8, %v319_v17  ;;  %473 = vmatpush.xpose.msra.mxu2 %v456_v24  ;;  %v510_v17 = vld [vmem:[#allocation3] sm:$0xff] }
  0xb7   : > { %499 = vmatpush.xpose.msra.mxu3 %v457_v25  ;;  %995 = vmatmul.msk.f32.gmra.mxu0 %vm326_vm8, %v320_v20 }
  0xbe   : > { %999 = vmatmul.msk.f32.gmra.mxu1 %vm326_vm8, %v320_v20 }
  0xc6   : > { %1000 = vmatmul.msk.f32.gmra.mxu1 %vm326_vm8, %v321_v16  ;;  %v1305_v16 = vmov 4  }
 0x12b   : > { %v1454_v27 = vpop.f32.mrf.mxu1  ;;  %v357_v28 = vpop.f32.mrf.mxu0 }
 0x12c   : > { %v401_v35 = vsel %vm216_vm0, %v1454_v27, -inf }
 0x133   : > { %v383_v29 = vpop.f32.mrf.mxu1 }
 0x134   : > { %v395_v30 = vmax.f32 %v357_v28, %v383_v29  ;;  %v360_v31 = vpop.f32.mrf.mxu0 }
 0x136   : > { %396 = vmax.xlane.f32.xlu1 %v395_v30 }
 0x13b   : > { %v386_v32 = vpop.f32.mrf.mxu1 }
 0x13c   : > { %v398_v33 = vmax.f32 %v360_v31, %v386_v32 }
 0x13e   : > { %399 = vmax.xlane.f32.xlu1 %v398_v33 }
 0x143   : > { %v1456_v34 = vpop.f32.mrf.mxu1 }
 0x144   : > { %v402_v36 = vsel %vm216_vm0, %v1456_v34, -inf }
 0x145   : > { %v403_v37 = vmax.f32 %v401_v35, %v402_v36  ;;  %v511_v36 = vld [vmem:[#allocation3 + $0x8] sm:$0xff] }
 0x147   : > { %404 = vmax.xlane.f32.xlu2 %v403_v37 }
 0x1a9   : > { %v397_v39 = vpop.xlane.xlu1 %396 }
 0x1aa   : > { %v406_v40 = vmax.f32 %v392_v38, %v397_v39 }
 0x1ac   : > { %540 = vst.msk [vmem:[#allocation2] sm:$0xff] %vm200_vm9, %v406_v40  ;;  %411 = vperm.xlu2 %1100, %v406_v40   ;;  %v442_v41 = vsub.f32 %v392_v38, %v406_v40 }
 0x1ae   : > { %v445_v43 = vmul.f32 1.442695, %v442_v41 }
 0x1b0   : > { %1115 = vpow2.f32 %v445_v43  ;;  %v512_v43 = vld [vmem:[#allocation3 + $0x10] sm:$0xf] }
 0x1b1   : > { %v400_v44 = vpop.xlane.xlu1 %399 }
 0x1b2   : > { %v407_v45 = vmax.f32 %v393_v42, %v400_v44 }
 0x1b4   : > { %541 = vst.msk [vmem:[#allocation2 + $0x8] sm:$0xff] %vm200_vm9, %v407_v45  ;;  %416 = vperm.xlu0 %1099, %v407_v45   ;;  %v443_v46 = vsub.f32 %v393_v42, %v407_v45 }
 0x1b6   : > { %v447_v48 = vmul.f32 1.442695, %v443_v46  ;;  %v1116_v50 = vpop.eup %1115 }
 0x1b8   : > { %1117 = vpow2.f32 %v447_v48 }
 0x1ba   : > { %v405_v49 = vpop.xlane.xlu2 %404 }
 0x1bb   : > { %v408_v51 = vmax.f32 %v394_v47, %v405_v49 }
 0x1bc   : > { %515 = vperm.xlu0 %1099, %v1116_v50  }
 0x1bd   : > { %v444_v52 = vsub.f32 %v394_v47, %v408_v51  ;;  %543 = vst.msk [vmem:[#allocation2 + $0x10] sm:$0xf] %vm203_vm10, %v408_v51  ;;  %421 = vperm.xlu1 %1101, %v408_v51  }
 0x1be   : > { %v1118_v54 = vpop.eup %1117 }
 0x1bf   : > { %v449_v53 = vmul.f32 1.442695, %v444_v52 }
 0x1c1   : > { %1119 = vpow2.f32 %v449_v53 }
 0x1c4   : > { %520 = vperm.xlu0 %1099, %v1118_v54  }
 0x1c5   : > { %1104 = vset.pattern.permute.xlu1 %v1305_v16 }
 0x1c7   : > { %v1120_v55 = vpop.eup %1119 }
 0x1c8   : > { %525 = vperm.xlu2 %1100, %v1120_v55  }
 0x1cc   : > { %1102 = vset.pattern.permute.xlu0 %v1305_v16 }
 0x1d0   : > { %1103 = vset.pattern.permute.xlu2 %v1305_v16 }
 0x206   : > { %v412_v57 = vpop.permute.xlu2 %411 }
 0x207   : > { %v424_v58 = vsub.f32 %v357_v28, %v412_v57  ;;  %v425_v59 = vsub.f32 %v383_v29, %v412_v57 }
 0x209   : > { %v430_v60 = vmul.f32 1.442695, %v424_v58  ;;  %v432_v61 = vmul.f32 1.442695, %v425_v59 }
 0x20b   : > { %1121 = vpow2.f32 %v430_v60 }
 0x20c   : > { %1123 = vpow2.f32 %v432_v61 }
 0x211   : > { %v1122_v62 = vpop.eup %1121 }
 0x212   : > { %v1124_v63 = vpop.eup %1123  ;;  %474 = vmatmul.f32.vlgmr.msra.gmra.mxu2 %v1122_v62 }
 0x213   : > { %500 = vmatmul.f32.vlgmr.msra.gmra.mxu3 %v1124_v63 }
 0x222   : > { %v526_v44 = vpop.permute.xlu2 %525 }
 0x223   : > { %v530_v47 = vmul.f32 %v526_v44, %v512_v43 }
 0x226   : > { %v417_v1 = vpop.permute.xlu0 %416 }
 0x227   : > { %v426_v2 = vsub.f32 %v360_v31, %v417_v1  ;;  %v427_v3 = vsub.f32 %v386_v32, %v417_v1 }
 0x229   : > { %v434_v4 = vmul.f32 1.442695, %v426_v2  ;;  %v436_v5 = vmul.f32 1.442695, %v427_v3 }
 0x22b   : > { %1125 = vpow2.f32 %v434_v4 }
 0x22c   : > { %1127 = vpow2.f32 %v436_v5 }
 0x22e   : > { %v516_v18 = vpop.permute.xlu0 %515 }
 0x22f   : > { %v422_v6 = vpop.permute.xlu1 %421  ;;  %v528_v21 = vmul.f32 %v516_v18, %v510_v17  ;;  %v1108_v18 = vld [vmem:[#allocation7 + $0x38] ss:$0 sm:$0xff] }
 0x230   : > { %v428_v7 = vsub.f32 %v1454_v27, %v422_v6  ;;  %v429_v8 = vsub.f32 %v1456_v34, %v422_v6 }
 0x231   : > { %v1126_v9 = vpop.eup %1125 }
 0x232   : > { %v1128_v10 = vpop.eup %1127  ;;  %v438_v11 = vmul.f32 1.442695, %v428_v7  ;;  %v440_v12 = vmul.f32 1.442695, %v429_v8  ;;  %477 = vmatmul.f32.gmra.mxu2 %v1126_v9 }
 0x233   : > { %503 = vmatmul.f32.gmra.mxu3 %v1128_v10  ;;  %v671_v10 = vld [vmem:[#allocation7 + $0x80] sm:$0xf] }
 0x234   : > { %1129 = vpow2.f32 %v438_v11  ;;  %v737_v11 = vld [vmem:[#allocation7 + $0x88] sm:$0xf] }
 0x235   : > { %1131 = vpow2.f32 %v440_v12  ;;  %v744_v12 = vld [vmem:[#allocation7 + $0x90] sm:$0xf] }
 0x236   : > { %v521_v37 = vpop.permute.xlu0 %520 }
 0x237   : > { %v529_v40 = vmul.f32 %v521_v37, %v511_v36 }
 0x23a   : > { %v1130_v13 = vpop.eup %1129 }
 0x23b   : > { %v1132_v14 = vpop.eup %1131  ;;  %480 = vmatmul.f32.gmra.mxu2 %v1130_v13 }
 0x23c   : > { %506 = vmatmul.f32.gmra.mxu3 %v1132_v14  ;;  %v754_v14 = vld [vmem:[#allocation7 + $0xa0] sm:$0xff] }
 0x295   : > { %v475_v19 = vpop.f32.mrf.mxu2 }
 0x296   : > { %v501_v20 = vpop.f32.mrf.mxu3 }
 0x297   : > { %v502_v22 = vadd.f32 %v501_v20, %v475_v19 }
 0x299   : > { %v531_v24 = vadd.f32 %v528_v21, %v502_v22 }
 0x29b   : > { %535 = vst.msk [vmem:[#allocation3] sm:$0xff] %vm205_vm12, %v531_v24  ;;  %v655_v24 = vld [vmem:[#allocation7 + $0x20] sm:$0xff] }
 0x2a2   : > { %v547_v25 = vld [vmem:[#allocation3] sm:$0xff] }
 0x2a3   : > { %1133 = vrcp.f32 %v547_v25  ;;  %1002 = vmatmul.msk.f32.vlgmr.msrb.gmra.mxu0 %vm326_vm8, %v547_v25  ;;  %v561_v29 = vand.u32 2147483648, %v547_v25  ;;  %v559_v31 = vand.u32 2147483647, %v547_v25  ;;  %vm555_vm14 = vweird.f32 %v547_v25 }
 0x2a5   : > { %v562_v33 = vor.u32 1.1754944e-38, %v561_v29  ;;  %vm560_vm1 = vcmp.eq.f32.partialorder %v559_v31, 8.507059e+37 }
 0x2a9   : > { %v1134_v26 = vpop.eup %1133 }
 0x2aa   : > { %v551_v27 = vmul.f32 %v1134_v26, %v547_v25  ;;  %vm556_vm13 = vweird.f32 %v1134_v26 }
 0x2ab   : > { %vm557_vm15 = vmor %vm555_vm14, %vm556_vm13 }
 0x2ac   : > { %v552_v28 = vsub.f32 1.0, %v551_v27 }
 0x2ae   : > { %v553_v30 = vmul.f32 %v1134_v26, %v552_v28 }
 0x2b0   : > { %v554_v32 = vadd.f32 %v1134_v26, %v553_v30 }
 0x2b2   : > { %v558_v34 = vsel %vm557_vm15, %v1134_v26, %v554_v32  ;;  %v656_v26 = vld [vmem:[#allocation7 + $0x28] sm:$0xf] }
 0x2b3   : > { %v563_v35 = vsel %vm560_vm1, %v562_v33, %v558_v34  ;;  %v654_v33 = vld [vmem:[#allocation7 + $0x18] sm:$0xff] }
 0x2b4   : > { %633 = vperm.xlu1 %1104, %v563_v35  }
 0x2b5   : > { %v478_v38 = vpop.f32.mrf.mxu2 }
 0x2b6   : > { %v504_v39 = vpop.f32.mrf.mxu3 }
 0x2b7   : > { %v505_v41 = vadd.f32 %v504_v39, %v478_v38  ;;  %v670_v39 = vld [vmem:[#allocation7 + $0x40] sm:$0xf] }
 0x2b9   : > { %v532_v42 = vadd.f32 %v529_v40, %v505_v41 }
 0x2bb   : > { %536 = vst.msk [vmem:[#allocation3 + $0x8] sm:$0xff] %vm205_vm12, %v532_v42  ;;  %vm706_vm12 = vcmask 76800  }
 0x2bc   : > { %1106 = vset.pattern.permute.xlu1 %v1300_v0 }
 0x2bd   : > { %740 = vperm.xlu1 %1106, %v737_v11   ;;  %v751_v11 = vld [vmem:[#allocation7 + $0x48] sm:$0xff] }
 0x2be   : > { %v481_v45 = vpop.f32.mrf.mxu2 }
 0x2bf   : > { %v507_v46 = vpop.f32.mrf.mxu3 }
 0x2c0   : > { %v508_v48 = vadd.f32 %v507_v46, %v481_v45 }
 0x2c2   : > { %v533_v49 = vadd.f32 %v530_v47, %v508_v48  ;;  %v548_v50 = vld [vmem:[#allocation3 + $0x8] sm:$0xff] }
 0x2c3   : > { %1135 = vrcp.f32 %v548_v50  ;;  %1003 = vmatmul.msk.f32.gmra.mxu0 %vm326_vm8, %v548_v50  ;;  %v575_v55 = vand.u32 2147483648, %v548_v50  ;;  %v573_v57 = vand.u32 2147483647, %v548_v50  ;;  %vm569_vm3 = vweird.f32 %v548_v50 }
 0x2c4   : > { %538 = vst.msk [vmem:[#allocation3 + $0x10] sm:$0xf] %vm208_vm11, %v533_v49  ;;  %vm662_vm11 = vcmask 1045504  }
 0x2c5   : > { %v576_v59 = vor.u32 1.1754944e-38, %v575_v55  ;;  %vm574_vm5 = vcmp.eq.f32.partialorder %v573_v57, 8.507059e+37  ;;  %757 = vperm.xlu1 %1106, %v753_v15  }
 0x2c9   : > { %v1136_v51 = vpop.eup %1135 }
 0x2ca   : > { %v565_v52 = vmul.f32 %v1136_v51, %v548_v50  ;;  %vm570_vm2 = vweird.f32 %v1136_v51 }
 0x2cb   : > { %v549_v53 = vld [vmem:[#allocation3 + $0x10] sm:$0xf]  ;;  %vm571_vm4 = vmor %vm569_vm3, %vm570_vm2 }
 0x2cc   : > { %1137 = vrcp.f32 %v549_v53  ;;  %1004 = vmatmul.msk.f32.gmra.mxu0 %vm326_vm8, %v549_v53  ;;  %v566_v54 = vsub.f32 1.0, %v565_v52  ;;  %v589_v2 = vand.u32 2147483648, %v549_v53  ;;  %v587_v4 = vand.u32 2147483647, %v549_v53 }
 0x2cd   : > { %vm583_vm7 = vweird.f32 %v549_v53 }
 0x2ce   : > { %v567_v56 = vmul.f32 %v1136_v51, %v566_v54  ;;  %v590_v6 = vor.u32 1.1754944e-38, %v589_v2  ;;  %vm588_vm10 = vcmp.eq.f32.partialorder %v587_v4, 8.507059e+37 }
 0x2d0   : > { %v568_v58 = vadd.f32 %v1136_v51, %v567_v56 }
 0x2d2   : > { %v1138_v60 = vpop.eup %1137  ;;  %v572_v61 = vsel %vm571_vm4, %v1136_v51, %v568_v58 }
 0x2d3   : > { %v577_v62 = vsel %vm574_vm5, %v576_v59, %v572_v61  ;;  %v579_v63 = vmul.f32 %v1138_v60, %v549_v53  ;;  %vm584_vm6 = vweird.f32 %v1138_v60 }
 0x2d4   : > { %638 = vperm.xlu2 %1103, %v577_v62   ;;  %vm585_vm9 = vmor %vm583_vm7, %vm584_vm6  ;;  %vm844_vm7 = vcmask 130048  }
 0x2d5   : > { %v580_v1 = vsub.f32 1.0, %v579_v63 }
 0x2d7   : > { %v581_v3 = vmul.f32 %v1138_v60, %v580_v1 }
 0x2d9   : > { %v582_v5 = vadd.f32 %v1138_v60, %v581_v3 }
 0x2db   : > { %v586_v7 = vsel %vm585_vm9, %v1138_v60, %v582_v5  ;;  %vm880_vm9 = vcmask 73728  }
 0x2dc   : > { %v591_v8 = vsel %vm588_vm10, %v590_v6, %v586_v7  ;;  %1105 = vset.pattern.permute.xlu2 %v1300_v0 }
 0x2dd   : > { %643 = vperm.xlu0 %1102, %v591_v8   ;;  %674 = vperm.xlu2 %1105, %v671_v10  }
 0x2e5   : > { %1107 = vset.pattern.permute.xlu0 %v1300_v0  ;;  %762 = vperm.xlu2 %1105, %v754_v14   ;;  %v838_v0 = vld [vmem:[#allocation7 + $0xa8] sm:$0xf] }
 0x2e6   : > { %747 = vperm.xlu0 %1107, %v744_v12  }
 0x2ed   : > { %841 = vperm.xlu2 %1105, %v838_v0  }
 0x320   : > { %v622_v9 = vpop.f32.mrf.mxu0 }
 0x326   : > { %v634_v19 = vpop.permute.xlu1 %633 }
 0x327   : > { %v646_v27 = vmul.f32 %v634_v19, %v622_v9 }
 0x329   : > { %v651_v31 = vadd.f32 %v1108_v18, %v646_v27 }
 0x32b   : > { %v657_v37 = vmul.f32 %v654_v33, %v651_v31 }
 0x32e   : > { %v639_v16 = vpop.permute.xlu2 %638 }
 0x32f   : > { %v741_v7 = vpop.permute.xlu1 %740 }
 0x337   : > { %v675_v40 = vpop.permute.xlu2 %674  ;;  %v758_v12 = vpop.permute.xlu1 %757 }
 0x340   : > { %v625_v13 = vpop.f32.mrf.mxu0 }
 0x341   : > { %v647_v17 = vmul.f32 %v639_v16, %v625_v13  ;;  %v763_v16 = vpop.permute.xlu2 %762 }
 0x343   : > { %v652_v20 = vadd.f32 %v1108_v18, %v647_v17 }
 0x345   : > { %v658_v29 = vmul.f32 %v655_v24, %v652_v20 }
 0x347   : > { %v663_v34 = vrot.slane %v658_v29, 2 }
 0x349   : > { %v628_v21 = vpop.f32.mrf.mxu0 }
 0x34f   : > { %v644_v22 = vpop.permute.xlu0 %643 }
 0x350   : > { %v648_v25 = vmul.f32 %v644_v22, %v628_v21 }
 0x352   : > { %v653_v28 = vadd.f32 %v1108_v18, %v648_v25 }
 0x354   : > { %v659_v30 = vmul.f32 %v656_v26, %v653_v28 }
 0x356   : > { %v664_v32 = vrot.slane %v659_v30, 2 }
 0x358   : > { %v669_v35 = vadd.f32 %v664_v32, %v658_v29  ;;  %v665_v36 = vsel %vm662_vm11, %v663_v34, %v664_v32  ;;  %v748_v8 = vpop.permute.xlu0 %747 }
 0x359   : > { %v668_v38 = vadd.f32 %v665_v36, %v657_v37 }
 0x35a   : > { %1005 = vmatpush.xpose.msk.msra.mxu1 %vm326_vm8, %v669_v35 }
 0x35e   : > { %1006 = vmatpush.xpose.msk.msra.mxu1 %vm326_vm8, %v668_v38 }
 0x361   : > { %1007 = vmatmul.msk.f32.vlgmr.msra.gmra.mxu1 %vm326_vm8, %v670_v39 }
 0x3de   : > { %v703_v41 = vpop.f32.mrf.mxu1 }
 0x3df   : > { %v1484_v42 = vadd.f32 %v703_v41, %v675_v40 }
 0x3e1   : > { %v707_v43 = vsel %vm706_vm12, %v1484_v42, 0.0 }
 0x3e2   : > { %v708_v44 = vrot.slane %v707_v43, 4 }
 0x3e4   : > { %v709_v45 = vadd.f32 %v708_v44, %v707_v43 }
 0x3e6   : > { %v710_v46 = vrot.slane %v709_v45, 2 }
 0x3e8   : > { %v711_v47 = vadd.f32 %v710_v46, %v709_v45 }
 0x3ea   : > { %v712_v48 = vrot.slane %v711_v47, 1 }
 0x3ec   : > { %v713_v49 = vadd.f32 %v712_v48, %v711_v47  ;;  %v837_v47 = vld [vmem:[#allocation7 + $0x58] sm:$0xf]  ;;  %v842_v48 = vpop.permute.xlu2 %841 }
 0x3ee   : > { %v714_v50 = vmul.f32 %v713_v49, %v1431_v23 }
 0x3f0   : > { %v715_v51 = vsub.f32 %v1484_v42, %v714_v50 }
 0x3f2   : > { %v716_v52 = vmul.f32 %v715_v51, %v715_v51 }
 0x3f4   : > { %v717_v53 = vsel %vm706_vm12, %v716_v52, 0.0 }
 0x3f5   : > { %v718_v54 = vrot.slane %v717_v53, 4 }
 0x3f7   : > { %v719_v55 = vadd.f32 %v718_v54, %v717_v53 }
 0x3f9   : > { %v720_v56 = vrot.slane %v719_v55, 2 }
 0x3fb   : > { %v721_v57 = vadd.f32 %v720_v56, %v719_v55 }
 0x3fd   : > { %v722_v58 = vrot.slane %v721_v57, 1 }
 0x3ff   : > { %v723_v59 = vadd.f32 %v722_v58, %v721_v57 }
 0x401   : > { %v724_v60 = vmul.f32 %v723_v59, %v1431_v23  ;;  %v752_v23 = vld [vmem:[#allocation7 + $0x50] sm:$0xff] }
 0x403   : > { %v725_v61 = vadd.f32 1e-05, %v724_v60  ;;  %v878_v60 = vld [vmem:[#allocation7 + $0x68] sm:$0x1] }
 0x405   : > { %1139 = vrsqrt.f32 %v725_v61  ;;  %vm732_vm14 = vweird.f32 %v725_v61 }
 0x40b   : > { %v1140_v62 = vpop.eup %1139 }
 0x40c   : > { %v727_v63 = vmul.f32 %v1140_v62, %v725_v61  ;;  %vm733_vm13 = vweird.f32 %v1140_v62 }
 0x40d   : > { %vm734_vm15 = vmor %vm732_vm14, %vm733_vm13 }
 0x40e   : > { %v728_v1 = vmul.f32 %v1140_v62, %v727_v63 }
 0x410   : > { %v729_v2 = vmul.f32 0.5, %v728_v1 }
 0x412   : > { %v730_v3 = vsub.f32 1.5, %v729_v2 }
 0x414   : > { %v731_v4 = vmul.f32 %v1140_v62, %v730_v3 }
 0x416   : > { %v735_v5 = vsel %vm734_vm15, %v1140_v62, %v731_v4 }
 0x417   : > { %v736_v6 = vmul.f32 %v735_v5, %v715_v51  ;;  %v869_v51 = vld [vmem:[#allocation7 + $0x60] sm:$0xf] }
 0x419   : > { %v743_v9 = vmul.f32 %v741_v7, %v736_v6 }
 0x41b   : > { %v750_v10 = vadd.f32 %v748_v8, %v743_v9 }
 0x41d   : > { %1008 = vmatpush.msk.msrb.mxu2 %vm216_vm0, %v750_v10 }
 0x41e   : > { %1009 = vmatmul.msk.f32.vlgmr.msrb.gmra.mxu2 %vm326_vm8, %v751_v11 }
 0x426   : > { %1010 = vmatmul.msk.f32.gmra.mxu2 %vm326_vm8, %v752_v23 }
 0x4a1   : > { %v791_v13 = vpop.f32.mrf.mxu2 }
 0x4a2   : > { %v792_v14 = vadd.f32 %v791_v13, %v758_v12 }
 0x4a4   : > { %v1011_v15 = vmul.f32 -1.442695, %v792_v14 }
 0x4a6   : > { %1141 = vpow2.f32 %v1011_v15 }
 0x4a9   : > { %v794_v17 = vpop.f32.mrf.mxu2 }
 0x4aa   : > { %v795_v18 = vadd.f32 %v794_v17, %v763_v16 }
 0x4ac   : > { %v1142_v19 = vpop.eup %1141  ;;  %v1012_v20 = vmul.f32 -1.442695, %v795_v18 }
 0x4ad   : > { %v803_v21 = vadd.f32 1.0, %v1142_v19 }
 0x4ae   : > { %1143 = vpow2.f32 %v1012_v20 }
 0x4af   : > { %1145 = vrcp.f32 %v803_v21  ;;  %vm810_vm8 = vweird.f32 %v803_v21  ;;  %v816_v33 = vand.u32 2147483648, %v803_v21  ;;  %v814_v36 = vand.u32 2147483647, %v803_v21 }
 0x4b1   : > { %v817_v40 = vor.u32 1.1754944e-38, %v816_v33  ;;  %vm815_vm6 = vcmp.eq.f32.partialorder %v814_v36, 8.507059e+37 }
 0x4b4   : > { %v1144_v22 = vpop.eup %1143 }
 0x4b5   : > { %v1146_v0 = vpop.eup %1145  ;;  %v804_v24 = vadd.f32 1.0, %v1144_v22 }
 0x4b6   : > { %v806_v25 = vmul.f32 %v1146_v0, %v803_v21  ;;  %vm811_vm0 = vweird.f32 %v1146_v0 }
 0x4b7   : > { %1147 = vrcp.f32 %v804_v24  ;;  %v831_v32 = vand.u32 2147483648, %v804_v24  ;;  %v829_v35 = vand.u32 2147483647, %v804_v24  ;;  %vm812_vm2 = vmor %vm810_vm8, %vm811_vm0  ;;  %vm825_vm3 = vweird.f32 %v804_v24 }
 0x4b8   : > { %v807_v26 = vsub.f32 1.0, %v806_v25 }
 0x4b9   : > { %v832_v39 = vor.u32 1.1754944e-38, %v831_v32  ;;  %vm830_vm5 = vcmp.eq.f32.partialorder %v829_v35, 8.507059e+37 }
 0x4ba   : > { %v808_v27 = vmul.f32 %v1146_v0, %v807_v26 }
 0x4bc   : > { %v809_v31 = vadd.f32 %v1146_v0, %v808_v27 }
 0x4bd   : > { %v1148_v28 = vpop.eup %1147 }
 0x4be   : > { %v821_v29 = vmul.f32 %v1148_v28, %v804_v24  ;;  %vm826_vm1 = vweird.f32 %v1148_v28  ;;  %v813_v38 = vsel %vm812_vm2, %v1146_v0, %v809_v31 }
 0x4bf   : > { %vm827_vm4 = vmor %vm825_vm3, %vm826_vm1  ;;  %v818_v44 = vsel %vm815_vm6, %v817_v40, %v813_v38 }
 0x4c0   : > { %v822_v30 = vsub.f32 1.0, %v821_v29  ;;  %v835_v46 = vmul.f32 %v818_v44, %v792_v14 }
 0x4c2   : > { %v823_v34 = vmul.f32 %v1148_v28, %v822_v30 }
 0x4c4   : > { %v824_v37 = vadd.f32 %v1148_v28, %v823_v34 }
 0x4c6   : > { %v828_v41 = vsel %vm827_vm4, %v1148_v28, %v824_v37 }
 0x4c7   : > { %v833_v43 = vsel %vm830_vm5, %v832_v39, %v828_v41 }
 0x4c8   : > { %v836_v45 = vmul.f32 %v833_v43, %v795_v18 }
 0x4ca   : > { %862 = vmatpush.msrb.mxu3 %v836_v45 }
 0x4cc   : > { %863 = vmatpush.msrb.mxu3 %v835_v46 }
 0x4cd   : > { %1013 = vmatmul.msk.f32.vlgmr.msrb.gmra.mxu3 %vm844_vm7, %v837_v47 }
 0x550   : > { %v865_v49 = vpop.f32.mrf.mxu3 }
 0x551   : > { %v866_v50 = vadd.f32 %v865_v49, %v842_v48 }
 0x553   : > { %v868_v52 = vadd.f32 %v866_v50, %v1484_v42 }
 0x555   : > { %v870_v53 = vmul.f32 %v869_v51, %v868_v52 }
 0x557   : > { %v871_v54 = vsel %vm706_vm12, %v870_v53, 0.0 }
 0x558   : > { %v872_v55 = vrot.slane %v871_v54, 4 }
 0x55a   : > { %v873_v56 = vadd.f32 %v872_v55, %v871_v54 }
 0x55c   : > { %v874_v57 = vrot.slane %v873_v56, 2 }
 0x55e   : > { %v875_v58 = vadd.f32 %v874_v57, %v873_v56 }
 0x560   : > { %v876_v59 = vrot.slane %v875_v58, 1 }
 0x562   : > { %v877_v61 = vadd.f32 %v876_v59, %v875_v58 }
 0x564   : > { %v879_v42 = vadd.f32 %v878_v60, %v877_v61 }
 0x566   : > { %881 = vst.msk [vmem:[%s193_s29] sm:$0x1] %vm880_vm9, %v879_v42 }
 0x567   : > { %1236 = shalt.err (!%p1233_p13)
}
 0x568   : > { %1024 = dma.vmem_to_hbm [thread:$0]  (%p1392_p4), %s894_s6, 16, %s896_s7, %s883_s8  }
 0x569 PF: > { %s907_s23 = sand.u32 1, %s1275_s9   ;;  %p1035_p0 = pnand %p986_p6, %p1400_p7 }
 0x56a   : > { %s908_s24 = scalar_lea.sflag [#allocation6], %s907_s23 }
 0x56b   : > { %p1036_p2 = pneg %p1035_p0 }
 0x56d   : > { %1270 = dma.done.wait (%p1036_p2), %s908_s24, 16  }
 0x56e   : > { %1272 = vsyncadd (%p1036_p2), %s908_s24, 4294967280  ;;  %s19_s14 = sadd.s32 1, %s1295_s14   ;;  %s1545_s9 = smov %s1279_s10 }
 0x56f   : > { %p16_p5 = scmp.ge.s32.totalorder %s19_s14, 4   ;;  %s1546_s10 = smov %s1283_s11 }
 0x570   : > { %s1547_s11 = smov %s1398_s4  ;;  %s1548_s12 = smov %s1291_s13 }
 0x571   : > { %s1549_s13 = smov %s1551_s26  ;;  %18 = sbr.rel (!%p16_p5) target bundleno = 7 (0x7), region = 85 }
 0x576   :  { %913 = vsyncpa [#allocation5], 1 }
 0x577   :  { %915 = vsyncpa [#allocation5 + $0x1], 1 }
 0x578   :  { %916 = vsyncpa [#allocation8], 1 }
 0x579   :  { %917 = vsyncpa [#allocation6], 1 }
 0x57a   :  { %919 = vsyncpa [#allocation6 + $0x1], 1 }

</bundles_post_ra>
